<compile_context>
chip_gen: v5e
topology: v5e:2x2
jax: 0.10.0
libtpu: 0.0.40
codegen_flags: <defaults>
</compile_context>

<pallas_src>
import functools

import jax
import jax.numpy as jnp
from jax.experimental import pallas as pl
from jax.experimental.pallas import tpu as pltpu


def _round_up(v: int, m: int) -> int:
    return ((v + m - 1) // m) * m


def _pick_tm(M: int) -> int:
    """Row-tile size: no dead rows for small batches, big MXU-friendly tiles for large ones."""
    M8 = _round_up(max(M, 1), 8)        # f32 sublane granularity is 8
    if M8 <= 128:
        return M8                        # small batch: tile == batch, zero wasted rows
    if M8 <= 512:
        return 128                       # keep grid length >= 2 (v7x: 2 TensorCores)
    return 256                           # large batch: full 256-row MXU tiles (v6e/v7x)


def _mlp_kernel(*refs, n_layers: int, neg_slope: float):
    """Fused MLP on one (tm, *) row tile.

    refs = (x_ref, w0_ref, b0_ref, w1_ref, b1_ref, ..., o_ref)
      x_ref: (tm, K0) f32   w_l: (K_l, N_l) bf16   b_l: (1, N_l) f32   o_ref: (tm, N_last) f32
    Weights/biases use constant index maps -> fetched once, VMEM-resident across the grid.
    """
    x_ref = refs[0]
    o_ref = refs[-1]

    h = x_ref[...].astype(jnp.float32)
    for l in range(n_layers):
        w_ref = refs[1 + 2 * l]
        b_ref = refs[2 + 2 * l]
        # bf16 MXU matmul with f32 accumulation.
        h = jnp.dot(h.astype(w_ref.dtype), w_ref[...],
                    preferred_element_type=jnp.float32)
        h = h + b_ref[...].astype(jnp.float32)
        if l < n_layers - 1:
            # LeakyReLU (valid for 0 < neg_slope < 1): single max, no mask vreg.
            h = jnp.maximum(h, neg_slope * h)
    o_ref[...] = h.astype(o_ref.dtype)


def prepare_hl_var_depth_params(params, *, lane=128, compute_dtype=jnp.bfloat16):
    """One-time weight prep (do this when params are created/updated, NOT per forward).

    params: list of (W, b) with W stored as (in_features, out_features), f32.
    Returns list of (W_padded_bf16, b_padded_f32_row, true_out_features).
    Row-padding matches the previous layer's padded width, column-padding rounds the
    output width up to a lane multiple (128) so stores are unmasked / lane-dense.
    Zero padding keeps the math exact: padded lanes carry exact zeros through LeakyReLU.
    """
    prepped = []
    in_dim = params[0][0].shape[0]
    for (w, b) in params:
        fan_in, fan_out = w.shape
        assert b.shape == (fan_out,)
        out_pad = _round_up(fan_out, lane)
        w_p = jnp.pad(w, ((0, in_dim - fan_in), (0, out_pad - fan_out))).astype(compute_dtype)
        b_p = jnp.pad(b, (0, out_pad - fan_out)).reshape(1, out_pad).astype(jnp.float32)
        prepped.append((w_p, b_p, fan_out))
        in_dim = out_pad
    return prepped


def hl_var_depth_forward(prepped_params, x, *, neg_slope=0.01, tm=None):
    """Forward pass of HLVarDepth as one fused Pallas kernel.

    prepped_params: output of prepare_hl_var_depth_params (padded bf16 weights).
    x: (M, input_size) float32 -> (M, num_bins) float32.
    """
    M, K = x.shape
    n_layers = len(prepped_params)
    assert n_layers >= 2
    assert prepped_params[0][0].shape[0] == K

    if tm is None:
        tm = _pick_tm(M)
    M_pad = _round_up(max(M, 1), tm)
    x_p = x if M_pad == M else jnp.pad(x, ((0, M_pad - M), (0, 0)))

    flat_inputs = [x_p]
    in_specs = [pl.BlockSpec((tm, K), lambda i: (i, 0))]

    resident_bytes = 0
    flops = 0
    for (w_p, b_p, _) in prepped_params:
        flat_inputs += [w_p, b_p]
        in_specs += [
            # Whole weight / bias, constant index map -> VMEM-resident. Single-buffered:
            # the block never changes, so double buffering would be pure VMEM waste.
            pl.BlockSpec(w_p.shape, lambda i: (0, 0), pipeline_mode=pl.Buffered(1)),
            pl.BlockSpec(b_p.shape, lambda i: (0, 0), pipeline_mode=pl.Buffered(1)),
        ]
        resident_bytes += w_p.size * w_p.dtype.itemsize + b_p.size * b_p.dtype.itemsize
        flops += 2 * M_pad * w_p.shape[0] * w_p.shape[1]

    N_out_pad = prepped_params[-1][0].shape[1]
    true_out = prepped_params[-1][2]

    if resident_bytes > (48 << 20):
        # TODO(synk): stream the largest layer's weights with pltpu.emit_pipeline (or fall back
        # to per-layer pallas_calls) instead of keeping everything VMEM-resident on v7x (64 MiB/TC).
        raise NotImplementedError("weights too large for fully VMEM-resident fusion")

    # Explicit VMEM budget: resident weights (x1 buffer) + double-buffered x/out tiles
    # + activation working set, with headroom; clamp to [32 MiB, 64 MiB] (v7x physical cap).
    max_width = max(w_p.shape[1] for (w_p, _, _) in prepped_params)
    io_bytes = 2 * tm * K * x.dtype.itemsize + 2 * tm * N_out_pad * x.dtype.itemsize
    act_bytes = 2 * tm * max_width * 4
    vmem_limit = int(1.5 * (resident_bytes + io_bytes + act_bytes)) + (4 << 20)
    vmem_limit = min(max(vmem_limit, 32 << 20), 64 << 20)

    bytes_accessed = (x_p.size * x_p.dtype.itemsize + resident_bytes
                      + M_pad * N_out_pad * x.dtype.itemsize)

    kernel = functools.partial(_mlp_kernel, n_layers=n_layers, neg_slope=neg_slope)
    out = pl.pallas_call(
        kernel,
        out_shape=jax.ShapeDtypeStruct((M_pad, N_out_pad), x.dtype),
        grid_spec=pltpu.PrefetchScalarGridSpec(
            num_scalar_prefetch=0,
            grid=(M_pad // tm,),                        # 1-D grid over batch row tiles only
            in_specs=in_specs,
            out_specs=pl.BlockSpec((tm, N_out_pad), lambda i: (i, 0)),
        ),
        compiler_params=pltpu.CompilerParams(
            dimension_semantics=("parallel",),          # batch tiles split across TCs (v7x)
            vmem_limit_bytes=vmem_limit,
        ),
        cost_estimate=pl.CostEstimate(
            flops=flops, transcendentals=0, bytes_accessed=bytes_accessed),
    )(*flat_inputs)

    # Slice away batch-row padding and output-lane padding.
    return out[:M, :true_out]


def init_hl_var_depth_params(key, input_size, hidden_size, depth, num_bins):
    """Deterministic init matching PyTorch nn.Linear defaults:
    W, b ~ U(-1/sqrt(fan_in), 1/sqrt(fan_in)). Weights stored as (in, out)."""
    assert depth > 1
    dims = [input_size] + [hidden_size] * (depth - 1) + [num_bins]
    params = []
    for l in range(depth):
        fan_in, fan_out = dims[l], dims[l + 1]
        key, kw, kb = jax.random.split(key, 3)
        bound = 1.0 / jnp.sqrt(jnp.float32(fan_in))
        w = jax.random.uniform(kw, (fan_in, fan_out), jnp.float32, -bound, bound)
        b = jax.random.uniform(kb, (fan_out,), jnp.float32, -bound, bound)
        params.append((w, b))
    return params


if __name__ == "__main__":
    # Small shapes consistent with the module (input_size, hidden_size, depth, num_bins).
    input_size, hidden_size, depth, num_bins = 8, 128, 3, 100
    batch = 16

    key = jax.random.PRNGKey(0)
    key, kx = jax.random.split(key)
    x = jax.random.normal(kx, (batch, input_size), jnp.float32)

    params = init_hl_var_depth_params(key, input_size, hidden_size, depth, num_bins)
    prepped = prepare_hl_var_depth_params(params)   # one-time pad + bf16 cast

    out = hl_var_depth_forward(prepped, x)
    out = jax.block_until_ready(out)
    assert out.shape == (batch, num_bins), out.shape

    # Reference 1: same bf16-weight / f32-accumulate math in pure JAX (tight tolerance).
    ref_bf16 = x
    for l, (w, b) in enumerate(params):
        ref_bf16 = jnp.dot(ref_bf16.astype(jnp.bfloat16), w.astype(jnp.bfloat16),
                           preferred_element_type=jnp.float32) + b
        if l < len(params) - 1:
            ref_bf16 = jnp.maximum(ref_bf16, 0.01 * ref_bf16)
    assert jnp.allclose(out, ref_bf16, atol=2e-3, rtol=2e-3), \
        float(jnp.max(jnp.abs(out - ref_bf16)))

    # Reference 2: full f32 math of the original module (loose tolerance due to bf16 matmuls).
    ref_f32 = x
    for l, (w, b) in enumerate(params):
        ref_f32 = ref_f32 @ w + b
        if l < len(params) - 1:
            ref_f32 = jnp.where(ref_f32 >= 0, ref_f32, 0.01 * ref_f32)
    assert jnp.allclose(out, ref_f32, atol=5e-2, rtol=5e-2), \
        float(jnp.max(jnp.abs(out - ref_f32)))

    print("KERNEL_OK")
</pallas_src>

<mosaic_0001>
module attributes {stable_mosaic.version = 11 : i64} {
  func.func @_mlp_kernel(%arg0: i32, %arg1: memref<16x8xf32, #tpu.memory_space<vmem>>, %arg2: memref<8x128xbf16, #tpu.memory_space<vmem>>, %arg3: memref<1x128xf32, #tpu.memory_space<vmem>>, %arg4: memref<128x128xbf16, #tpu.memory_space<vmem>>, %arg5: memref<1x128xf32, #tpu.memory_space<vmem>>, %arg6: memref<128x128xbf16, #tpu.memory_space<vmem>>, %arg7: memref<1x128xf32, #tpu.memory_space<vmem>>, %arg8: memref<16x128xf32, #tpu.memory_space<vmem>>) attributes {dimension_semantics = [#tpu.dimension_semantics<parallel>], iteration_bounds = array<i64: 1>, scalar_prefetch = 0 : i64, scratch_operands = 0 : i64, tpu.core_type = #tpu.core_type<tc>, window_params = [{transform_indices = @transform_0, window_bounds = array<i64: 16, 8>}, {pipeline_mode = #tpu.pipeline_mode<synchronous>, transform_indices = @transform_1, window_bounds = array<i64: 8, 128>}, {pipeline_mode = #tpu.pipeline_mode<synchronous>, transform_indices = @transform_2, window_bounds = array<i64: 1, 128>}, {pipeline_mode = #tpu.pipeline_mode<synchronous>, transform_indices = @transform_3, window_bounds = array<i64: 128, 128>}, {pipeline_mode = #tpu.pipeline_mode<synchronous>, transform_indices = @transform_4, window_bounds = array<i64: 1, 128>}, {pipeline_mode = #tpu.pipeline_mode<synchronous>, transform_indices = @transform_5, window_bounds = array<i64: 128, 128>}, {pipeline_mode = #tpu.pipeline_mode<synchronous>, transform_indices = @transform_6, window_bounds = array<i64: 1, 128>}, {transform_indices = @transform_7, window_bounds = array<i64: 16, 128>}]} {
    %c0 = arith.constant 0 : index
    %c0_0 = arith.constant 0 : index
    %0 = vector.load %arg1[%c0, %c0_0] : memref<16x8xf32, #tpu.memory_space<vmem>>, vector<16x8xf32>
    %1 = arith.truncf %0 : vector<16x8xf32> to vector<16x8xbf16>
    %c0_1 = arith.constant 0 : index
    %c0_2 = arith.constant 0 : index
    %2 = vector.load %arg2[%c0_1, %c0_2] : memref<8x128xbf16, #tpu.memory_space<vmem>>, vector<8x128xbf16>
    %cst = arith.constant dense<0.000000e+00> : vector<16x128xf32>
    %3 = tpu.matmul %1, %2, %cst {dimension_numbers = #tpu.dot_dimension_numbers<[1], [0], [0], [1], [0, 0, 1, 1], [], []>} : vector<16x8xbf16>, vector<8x128xbf16>, vector<16x128xf32> -> vector<16x128xf32>
    %c0_3 = arith.constant 0 : index
    %c0_4 = arith.constant 0 : index
    %4 = vector.load %arg3[%c0_3, %c0_4] : memref<1x128xf32, #tpu.memory_space<vmem>>, vector<1x128xf32>
    %5 = vector.broadcast %4 : vector<1x128xf32> to vector<16x128xf32>
    %6 = arith.addf %3, %5 : vector<16x128xf32>
    %cst_5 = arith.constant 0.00999999977 : f32
    %7 = vector.broadcast %cst_5 : f32 to vector<16x128xf32>
    %8 = arith.mulf %7, %6 : vector<16x128xf32>
    %9 = arith.maximumf %6, %8 : vector<16x128xf32>
    %10 = arith.truncf %9 : vector<16x128xf32> to vector<16x128xbf16>
    %c0_6 = arith.constant 0 : index
    %c0_7 = arith.constant 0 : index
    %11 = vector.load %arg4[%c0_6, %c0_7] : memref<128x128xbf16, #tpu.memory_space<vmem>>, vector<128x128xbf16>
    %cst_8 = arith.constant dense<0.000000e+00> : vector<16x128xf32>
    %12 = tpu.matmul %10, %11, %cst_8 {dimension_numbers = #tpu.dot_dimension_numbers<[1], [0], [0], [1], [0, 0, 1, 1], [], []>} : vector<16x128xbf16>, vector<128x128xbf16>, vector<16x128xf32> -> vector<16x128xf32>
    %c0_9 = arith.constant 0 : index
    %c0_10 = arith.constant 0 : index
    %13 = vector.load %arg5[%c0_9, %c0_10] : memref<1x128xf32, #tpu.memory_space<vmem>>, vector<1x128xf32>
    %14 = vector.broadcast %13 : vector<1x128xf32> to vector<16x128xf32>
    %15 = arith.addf %12, %14 : vector<16x128xf32>
    %cst_11 = arith.constant 0.00999999977 : f32
    %16 = vector.broadcast %cst_11 : f32 to vector<16x128xf32>
    %17 = arith.mulf %16, %15 : vector<16x128xf32>
    %18 = arith.maximumf %15, %17 : vector<16x128xf32>
    %19 = arith.truncf %18 : vector<16x128xf32> to vector<16x128xbf16>
    %c0_12 = arith.constant 0 : index
    %c0_13 = arith.constant 0 : index
    %20 = vector.load %arg6[%c0_12, %c0_13] : memref<128x128xbf16, #tpu.memory_space<vmem>>, vector<128x128xbf16>
    %cst_14 = arith.constant dense<0.000000e+00> : vector<16x128xf32>
    %21 = tpu.matmul %19, %20, %cst_14 {dimension_numbers = #tpu.dot_dimension_numbers<[1], [0], [0], [1], [0, 0, 1, 1], [], []>} : vector<16x128xbf16>, vector<128x128xbf16>, vector<16x128xf32> -> vector<16x128xf32>
    %c0_15 = arith.constant 0 : index
    %c0_16 = arith.constant 0 : index
    %22 = vector.load %arg7[%c0_15, %c0_16] : memref<1x128xf32, #tpu.memory_space<vmem>>, vector<1x128xf32>
    %23 = vector.broadcast %22 : vector<1x128xf32> to vector<16x128xf32>
    %24 = arith.addf %21, %23 : vector<16x128xf32>
    %c0_17 = arith.constant 0 : index
    %c0_18 = arith.constant 0 : index
    %25 = vector.load %arg8[%c0_17, %c0_18] : memref<16x128xf32, #tpu.memory_space<vmem>>, vector<16x128xf32>
    tpu.vector_store %arg8[%c0_17, %c0_18], %24 {strides = array<i32>} : memref<16x128xf32, #tpu.memory_space<vmem>>, vector<16x128xf32>,
    return
  }
  func.func @transform_0(%arg0: i32) -> (i32, i32) {
    %c0_i32 = arith.constant 0 : i32
    %c0_i32_0 = arith.constant 0 : i32
    return %arg0, %c0_i32 : i32, i32
  }
  func.func @transform_1(%arg0: i32) -> (i32, i32) {
    %c0_i32 = arith.constant 0 : i32
    %c0_i32_0 = arith.constant 0 : i32
    %c0_i32_1 = arith.constant 0 : i32
    return %c0_i32, %c0_i32_0 : i32, i32
  }
  func.func @transform_2(%arg0: i32) -> (i32, i32) {
    %c0_i32 = arith.constant 0 : i32
    %c0_i32_0 = arith.constant 0 : i32
    %c0_i32_1 = arith.constant 0 : i32
    return %c0_i32, %c0_i32_0 : i32, i32
  }
  func.func @transform_3(%arg0: i32) -> (i32, i32) {
    %c0_i32 = arith.constant 0 : i32
    %c0_i32_0 = arith.constant 0 : i32
    %c0_i32_1 = arith.constant 0 : i32
    return %c0_i32, %c0_i32_0 : i32, i32
  }
  func.func @transform_4(%arg0: i32) -> (i32, i32) {
    %c0_i32 = arith.constant 0 : i32
    %c0_i32_0 = arith.constant 0 : i32
    %c0_i32_1 = arith.constant 0 : i32
    return %c0_i32, %c0_i32_0 : i32, i32
  }
  func.func @transform_5(%arg0: i32) -> (i32, i32) {
    %c0_i32 = arith.constant 0 : i32
    %c0_i32_0 = arith.constant 0 : i32
    %c0_i32_1 = arith.constant 0 : i32
    return %c0_i32, %c0_i32_0 : i32, i32
  }
  func.func @transform_6(%arg0: i32) -> (i32, i32) {
    %c0_i32 = arith.constant 0 : i32
    %c0_i32_0 = arith.constant 0 : i32
    %c0_i32_1 = arith.constant 0 : i32
    return %c0_i32, %c0_i32_0 : i32, i32
  }
  func.func @transform_7(%arg0: i32) -> (i32, i32) {
    %c0_i32 = arith.constant 0 : i32
    %c0_i32_0 = arith.constant 0 : i32
    return %arg0, %c0_i32 : i32, i32
  }
}

</mosaic_0001>

<bundles_post_ra>
// kernel: tpu_custom_call.1
= control target key start
LH: loop header
LB: loop body
LE: loop exit
PB: predicated region body
PF: predicated region fallthrough
CT: control target
= control target key end

     0   :  { %12 = vsyncpa [#allocation3], 0  ;;  %s529_s0 = inlined_call_operand.vmem [shape: f32[16,8], index: 0, kind: input, shape index: {}]   ;;  %s530_s1 = inlined_call_operand.vmem [shape: bf16[8,128], index: 1, kind: input, shape index: {}]   ;;  %s531_s2 = inlined_call_operand.vmem [shape: f32[1,128], index: 2, kind: input, shape index: {}]   ;;  %s532_s3 = inlined_call_operand.hbm [shape: bf16[128,128], index: 3, kind: input, shape index: {}]   ;;  %s533_s4 = inlined_call_operand.vmem [shape: f32[1,128], index: 4, kind: input, shape index: {}]   ;;  %s534_s5 = inlined_call_operand.hbm [shape: bf16[128,128], index: 5, kind: input, shape index: {}]   ;;  %s535_s6 = inlined_call_operand.vmem [shape: f32[1,128], index: 6, kind: input, shape index: {}]   ;;  %s536_s7 = inlined_call_operand.hbm [shape: f32[16,128], index: 7, kind: output, shape index: {}]  }
   0x1   :  { %13 = vsyncpa [#allocation6], 0 }
   0x2   :  { %14 = vsyncpa [#allocation4], 0  ;;  %s25_s26 = sshll.u32 %s532_s3, 4  ;;  %s455_s27 = smov [#allocation2]   ;;  %s26_s26 = int_to_ptr.hbm [resolvable:$true] %s25_s26 }
   0x3   :  { %s27_s28 = sshll.u32 %s455_s27, 4  ;;  %s40_s8 = sshll.u32 %s534_s5, 4  ;;  %s28_s28 = int_to_ptr.vmem [resolvable:$true] %s27_s28  ;;  %s41_s8 = int_to_ptr.hbm [resolvable:$true] %s40_s8 }
   0x4   :  { %s456_s9 = smov 64   ;;  %s457_s10 = smov 4  }
   0x5   :  { %33 = dma.hbm_to_vmem [thread:$0]  %s26_s26, 1024, %s28_s28, [#allocation3], %s456_s9, %s456_s9, %s457_s10  }
   0x6   :  { %s458_s11 = smov [#allocation5]  }
   0x7   :  { %s42_s12 = sshll.u32 %s458_s11, 4  ;;  %s43_s12 = int_to_ptr.vmem [resolvable:$true] %s42_s12 }
   0x8   :  { %48 = dma.hbm_to_vmem [thread:$0]  %s41_s8, 1024, %s43_s12, [#allocation6], %s456_s9, %s456_s9, %s457_s10  }
   0x9   :  { %449 = dma.done.wait [#allocation3], 1024  }
   0xa   :  { %450 = vsyncadd [#allocation3], 4294966272 }
   0xb   :  { %451 = dma.done.wait [#allocation6], 1024  }
   0xc   :  { %452 = vsyncadd [#allocation6], 4294966272  ;;  %vm72_vm0 = vcmask 1043456   ;;  %v63_v0 = vld [vmem:[%s530_s1] sm:$0xf]  ;;  %v61_v2 = vld [vmem:[%s529_s0 + $0x8] sm:$0xff] }
   0xd   :  { %v60_v1 = vld [vmem:[%s529_s0] sm:$0xff]  ;;  %v74_v3 = vsel %vm72_vm0, %v63_v0, 0  ;;  %v358_v5 = vld [vmem:[#allocation2 + $0x38] sm:$0xff]  ;;  %vm68_vm1 = vcmask 64512   ;;  %v357_v6 = vld [vmem:[#allocation2 + $0x30] sm:$0xff]  ;;  %s459_s20 = smov [#allocation7]  }
   0xe   :  { %v62_v4 = vpack.c.bf16 %v61_v2, %v60_v1  ;;  %83 = vmatpush.bf16.msra.mxu0 %v74_v3  ;;  %163 = vmatpush.bf16.msra.mxu1 %v358_v5  ;;  %v356_v7 = vld [vmem:[#allocation2 + $0x28] sm:$0xff]  ;;  %v355_v8 = vld [vmem:[#allocation2 + $0x20] sm:$0xff]  ;;  %v354_v9 = vld [vmem:[#allocation2 + $0x18] sm:$0xff]  ;;  %s270_s21 = sshll.u32 %s459_s20, 4  ;;  %s272_s23 = sshll.u32 %s536_s7, 4  ;;  %s271_s21 = int_to_ptr.vmem [resolvable:$true] %s270_s21  ;;  %s273_s23 = int_to_ptr.hbm [resolvable:$true] %s272_s23 }
   0xf   :  { %v353_v10 = vld [vmem:[#allocation2 + $0x10] sm:$0xff]  ;;  %v352_v11 = vld [vmem:[#allocation2 + $0x8] sm:$0xff]  ;;  %v351_v12 = vld [vmem:[#allocation2] sm:$0xff]  ;;  %s460_s24 = smov 128   ;;  %s461_s25 = smov 8  }
  0x10   :  { %v366_v13 = vld [vmem:[#allocation5 + $0x38] sm:$0xff]  ;;  %v365_v14 = vld [vmem:[#allocation5 + $0x30] sm:$0xff]  ;;  %v364_v15 = vld [vmem:[#allocation5 + $0x28] sm:$0xff] }
  0x11   :  { %286 = vmatmul.msk.bf16.vlgmr.msra.gmra.mxu0 %vm68_vm1, %v62_v4  ;;  %250 = vmatpush.bf16.msra.mxu2 %v366_v13  ;;  %v363_v16 = vld [vmem:[#allocation5 + $0x20] sm:$0xff]  ;;  %v362_v27 = vld [vmem:[#allocation5 + $0x18] sm:$0xff]  ;;  %v361_v28 = vld [vmem:[#allocation5 + $0x10] sm:$0xff] }
  0x12   :  { %164 = vmatpush.bf16.msra.mxu1 %v357_v6  ;;  %v374_v18 = vld [vmem:[%s531_s2] ss:$0 sm:$0xff]  ;;  %v360_v29 = vld [vmem:[#allocation5 + $0x8] sm:$0xff] }
  0x13   :  { %v359_v30 = vld [vmem:[#allocation5] sm:$0xff] }
  0x14   :  { %v375_v32 = vld [vmem:[%s533_s4] ss:$0 sm:$0xff] }
  0x15   :  { %251 = vmatpush.bf16.msra.mxu2 %v365_v14  ;;  %v376_v41 = vld [vmem:[%s535_s6] ss:$0 sm:$0xff] }
  0x16   :  { %165 = vmatpush.bf16.msra.mxu1 %v356_v7 }
  0x19   :  { %252 = vmatpush.bf16.msra.mxu2 %v364_v15 }
  0x1a   :  { %166 = vmatpush.bf16.msra.mxu1 %v355_v8 }
  0x1d   :  { %253 = vmatpush.bf16.msra.mxu2 %v363_v16 }
  0x1e   :  { %167 = vmatpush.bf16.msra.mxu1 %v354_v9 }
  0x21   :  { %254 = vmatpush.bf16.msra.mxu2 %v362_v27 }
  0x22   :  { %168 = vmatpush.bf16.msra.mxu1 %v353_v10 }
  0x25   :  { %255 = vmatpush.bf16.msra.mxu2 %v361_v28 }
  0x26   :  { %169 = vmatpush.bf16.msra.mxu1 %v352_v11 }
  0x29   :  { %256 = vmatpush.bf16.msra.mxu2 %v360_v29 }
  0x2a   :  { %170 = vmatpush.bf16.msra.mxu1 %v351_v12 }
  0x2d   :  { %257 = vmatpush.bf16.msra.mxu2 %v359_v30 }
  0x8e   :  { %v85_v17 = vpop.f32.mrf.mxu0 }
  0x8f   :  { %v86_v19 = vadd.f32 %v374_v18, %v85_v17 }
  0x91   :  { %v90_v21 = vmul.f32 0.01, %v86_v19 }
  0x93   :  { %v92_v24 = vmax.f32 %v86_v19, %v90_v21 }
  0x96   :  { %v87_v20 = vpop.f32.mrf.mxu0 }
  0x97   :  { %v88_v22 = vadd.f32 %v374_v18, %v87_v20 }
  0x99   :  { %v91_v23 = vmul.f32 0.01, %v88_v22 }
  0x9b   :  { %v93_v25 = vmax.f32 %v88_v22, %v91_v23 }
  0x9d   :  { %v94_v26 = vpack.c.bf16 %v93_v25, %v92_v24 }
  0x9f   :  { %171 = vmatmul.bf16.vlgmr.msra.gmra.mxu1 %v94_v26 }
 0x11c   :  { %v172_v31 = vpop.f32.mrf.mxu1 }
 0x11d   :  { %v173_v33 = vadd.f32 %v375_v32, %v172_v31 }
 0x11f   :  { %v177_v35 = vmul.f32 0.01, %v173_v33 }
 0x121   :  { %v179_v38 = vmax.f32 %v173_v33, %v177_v35 }
 0x124   :  { %v174_v34 = vpop.f32.mrf.mxu1 }
 0x125   :  { %v175_v36 = vadd.f32 %v375_v32, %v174_v34 }
 0x127   :  { %v178_v37 = vmul.f32 0.01, %v175_v36 }
 0x129   :  { %v180_v39 = vmax.f32 %v175_v36, %v178_v37 }
 0x12b   :  { %v181_v40 = vpack.c.bf16 %v180_v39, %v179_v38 }
 0x12d   :  { %258 = vmatmul.bf16.vlgmr.msra.gmra.mxu2 %v181_v40 }
 0x1b0   :  { %v259_v42 = vpop.f32.mrf.mxu2 }
 0x1b1   :  { %v260_v43 = vadd.f32 %v376_v41, %v259_v42 }
 0x1b3   :  { %264 = vst [vmem:[#allocation7] sm:$0xff] %v260_v43 }
 0x1b8   :  { %v261_v44 = vpop.f32.mrf.mxu2 }
 0x1b9   :  { %v262_v45 = vadd.f32 %v376_v41, %v261_v44 }
 0x1bb   :  { %265 = vst [vmem:[#allocation7 + $0x8] sm:$0xff] %v262_v45 }
 0x1bc   :  { %278 = dma.vmem_to_hbm [thread:$0]  %s271_s21, 256, %s273_s23, [#allocation4], %s460_s24, %s460_s24, %s461_s25  }
 0x1bd   :  { %453 = dma.done.wait [#allocation4], 256  }
 0x1be   :  { %454 = vsyncadd [#allocation4], 4294967040 }
 0x1bf   :  { %283 = vsyncpa [#allocation3], 1 }
 0x1c0   :  { %284 = vsyncpa [#allocation6], 1 }
 0x1c1   :  { %285 = vsyncpa [#allocation4], 1 }

</bundles_post_ra>
